<compile_context>
chip_gen: v6e
topology: v6e:2x2x1
jax: 0.10.0
libtpu: 0.0.40
codegen_flags: <defaults>
</compile_context>

<pallas_src>
import functools

import jax
import jax.numpy as jnp
from jax.experimental import pallas as pl
from jax.experimental.pallas import tpu as pltpu


def _round_up(n: int, m: int) -> int:
    return ((n + m - 1) // m) * m


def _rbf_kernel(x_ref, w1_ref, b1_ref, seg_ref, b2_ref, o_ref, *, act_bf16=False):
    # fc1 on the MXU: [R, P*D_in] @ [P*D_in, P*H] (block-diagonal w1) -> f32 accumulate.
    h = jnp.dot(x_ref[...], w1_ref[...], preferred_element_type=jnp.float32)
    h = h + b1_ref[...]                                    # broadcast [1, P*H]
    if act_bf16:
        # Optional: packed-bf16 exp on the EUP (v6e/v7x) if the EUP is the binding unit.
        hb = h.astype(jnp.bfloat16)
        a = jnp.exp(-(hb * hb)).astype(jnp.float32)
    else:
        a = jnp.exp(-(h * h))                              # RadialBasis phi(x)=exp(-x^2)
    # fc2 (H -> 1) for all P packed rows at once: segmented, w2-weighted lane reduce as a
    # single MXU matmul against the [P*H, P] block-diagonal seg matrix (kron(I_P, w2)).
    y = jnp.dot(a, seg_ref[...], preferred_element_type=jnp.float32)   # [R, P]
    o_ref[...] = (y + b2_ref[0, 0]).astype(o_ref.dtype)   # scalar bias from SMEM


_SPLIT_THRESHOLD = 4096   # above this batch size, always emit >=2 tiles (v7x has 2 TensorCores)


def rbf_forward(x, w1, b1, w2, b2, *, tile_b=8192, use_bf16=False, act_bf16=False):
    """x: [B, D_in]; w1: [D_in, H]; b1: [1, H] or [H]; w2: [H, 1] or [1, H]; b2: scalar-ish.

    Returns [B, 1], matching Linear(input_n, output_n) -> exp(-x^2) -> Linear(output_n, 1).
    """
    out_dtype = x.dtype
    B, D_in = x.shape
    H = w1.shape[1]

    # ---- one-time layout plumbing (wrapper-side, outside the hot loop) ------------------
    # Pack P consecutive batch rows per lane row so vregs are lane-dense when D_in/H << 128.
    P = max(1, 128 // max(D_in, H)) if (D_in <= 128 and H <= 128) else 1

    b1 = jnp.reshape(b1, (1, H)).astype(jnp.float32)
    w2_col = jnp.reshape(w2, (H, 1)).astype(jnp.float32)
    eye = jnp.eye(P, dtype=jnp.float32)
    w1_bd = jnp.kron(eye, w1.astype(jnp.float32))          # [P*D_in, P*H] block-diagonal
    b1_t = jnp.tile(b1, (1, P))                            # [1, P*H]
    seg = jnp.kron(eye, w2_col)                            # [P*H, P] segmented fc2 reduce
    b2 = jnp.reshape(b2, (1, 1)).astype(jnp.float32)

    compute_dtype = jnp.bfloat16 if use_bf16 else jnp.float32
    x = x.astype(compute_dtype)
    w1_bd = w1_bd.astype(compute_dtype)

    # ---- batch tiling --------------------------------------------------------------------
    sub = 16 if use_bf16 else 8            # sublane packing of the compute dtype
    row_align = sub * P                    # tile rows must split into whole packed vreg rows
    if B > tile_b:
        num_tiles = -(-B // tile_b)
    elif B >= _SPLIT_THRESHOLD:
        num_tiles = 2                      # keep both v7x TensorCores busy for mid-size B
    else:
        num_tiles = 1
    tile_b = _round_up(-(-B // num_tiles), row_align)      # balanced tiles, minimal padding
    Bp = tile_b * num_tiles
    if Bp != B:
        # Padded rows produce finite garbage (exp(-b1^2)@w2 + b2); truncated before return.
        x = jnp.pad(x, ((0, Bp - B), (0, 0)))

    x_p = jnp.reshape(x, (Bp // P, P * D_in))              # free row-major repack
    R = tile_b // P                                        # packed rows per grid step

    cost = pl.CostEstimate(
        flops=2 * (Bp // P) * (P * D_in) * (P * H) + 2 * (Bp // P) * (P * H) * P,
        transcendentals=Bp * H,
        bytes_accessed=(x_p.size * x_p.dtype.itemsize
                        + w1_bd.size * w1_bd.dtype.itemsize
                        + (b1_t.size + seg.size + b2.size) * 4
                        + (Bp // P) * P * jnp.dtype(out_dtype).itemsize),
    )

    out = pl.pallas_call(
        functools.partial(_rbf_kernel, act_bf16=act_bf16),
        out_shape=jax.ShapeDtypeStruct((Bp // P, P), out_dtype),
        grid=(num_tiles,),
        in_specs=[
            pl.BlockSpec((R, P * D_in), lambda i: (i, 0)),        # streamed / double-buffered x
            pl.BlockSpec((P * D_in, P * H), lambda i: (0, 0)),    # VMEM-resident block-diag w1
            pl.BlockSpec((1, P * H), lambda i: (0, 0)),           # resident tiled bias row
            pl.BlockSpec((P * H, P), lambda i: (0, 0)),           # resident fc2 seg-sum matrix
            pl.BlockSpec(memory_space=pltpu.MemorySpace.SMEM),    # b2 scalar in SMEM
        ],
        out_specs=pl.BlockSpec((R, P), lambda i: (i, 0)),         # P-lane-wide output block
        compiler_params=pltpu.CompilerParams(
            dimension_semantics=("parallel",)),
        cost_estimate=cost,
    )(x_p, w1_bd, b1_t, seg, b2)

    # [Bp/P, P] -> [Bp, 1] is a free row-major reshape; then drop the padded rows.
    return jnp.reshape(out, (Bp, 1))[:B]


def init_params(key, input_n, output_n, dtype=jnp.float32):
    """Deterministic PyTorch-style Linear init: U(-1/sqrt(fan_in), 1/sqrt(fan_in))."""
    k1, k2, k3, k4 = jax.random.split(key, 4)
    bound1 = 1.0 / (input_n ** 0.5)
    bound2 = 1.0 / (output_n ** 0.5)
    # stored transposed relative to PyTorch's [out, in] convention
    w1 = jax.random.uniform(k1, (input_n, output_n), dtype, -bound1, bound1)
    b1 = jax.random.uniform(k2, (1, output_n), dtype, -bound1, bound1)
    w2 = jax.random.uniform(k3, (output_n, 1), dtype, -bound2, bound2)
    b2 = jax.random.uniform(k4, (1, 1), dtype, -bound2, bound2)
    return w1, b1, w2, b2


def _reference(x, w1, b1, w2, b2):
    h = x @ w1 + b1
    return jnp.exp(-(h ** 2)) @ w2 + b2


if __name__ == "__main__":
    key = jax.random.PRNGKey(0)
    kx1, kx2, kx3, kp = jax.random.split(key, 4)

    input_n, output_n = 32, 32
    w1, b1, w2, b2 = init_params(kp, input_n, output_n)

    # small single-tile case (exercises row padding + 4-row lane packing)
    B1 = 8
    x1 = jax.random.normal(kx1, (B1, input_n), jnp.float32)
    out1 = jax.block_until_ready(rbf_forward(x1, w1, b1, w2, b2))
    ref1 = _reference(x1, w1, b1, w2, b2)
    assert out1.shape == (B1, 1)
    assert jnp.allclose(out1, ref1, atol=2e-5, rtol=1e-5), "mismatch vs reference (small batch)"

    # multi-tile case (small explicit tile to exercise the batch grid without a huge batch)
    B2 = 600
    x2 = jax.random.normal(kx2, (B2, input_n), jnp.float32)
    out2 = jax.block_until_ready(rbf_forward(x2, w1, b1, w2, b2, tile_b=128))
    ref2 = _reference(x2, w1, b1, w2, b2)
    assert out2.shape == (B2, 1)
    assert jnp.allclose(out2, ref2, atol=2e-5, rtol=1e-5), "mismatch vs reference (tiled batch)"

    # bf16 x-stream path (halves HBM traffic on v5e/v6e); looser tolerance for bf16 inputs
    B3 = 64
    x3 = jax.random.normal(kx3, (B3, input_n), jnp.float32)
    out3 = jax.block_until_ready(rbf_forward(x3, w1, b1, w2, b2, use_bf16=True))
    ref3 = _reference(x3, w1, b1, w2, b2)
    assert out3.shape == (B3, 1)
    assert jnp.allclose(out3, ref3, atol=5e-2, rtol=5e-2), "mismatch vs reference (bf16 path)"

    print("KERNEL_OK")
</pallas_src>

<mosaic_0001>
module attributes {stable_mosaic.version = 11 : i64} {
  func.func @_rbf_kernel(%arg0: i32, %arg1: memref<8x128xf32, #tpu.memory_space<vmem>>, %arg2: memref<128x128xf32, #tpu.memory_space<vmem>>, %arg3: memref<1x128xf32, #tpu.memory_space<vmem>>, %arg4: memref<128x4xf32, #tpu.memory_space<vmem>>, %arg5: memref<1x1xf32, #tpu.memory_space<smem>>, %arg6: memref<8x4xf32, #tpu.memory_space<vmem>>) attributes {dimension_semantics = [#tpu.dimension_semantics<parallel>], iteration_bounds = array<i64: 1>, scalar_prefetch = 0 : i64, scratch_operands = 0 : i64, tpu.core_type = #tpu.core_type<tc>, window_params = [{transform_indices = @transform_0, window_bounds = array<i64: 8, 128>}, {pipeline_mode = #tpu.pipeline_mode<synchronous>, transform_indices = @transform_1, window_bounds = array<i64: 128, 128>}, {pipeline_mode = #tpu.pipeline_mode<synchronous>, transform_indices = @transform_2, window_bounds = array<i64: 1, 128>}, {pipeline_mode = #tpu.pipeline_mode<synchronous>, transform_indices = @transform_3, window_bounds = array<i64: 128, 4>}, {transform_indices = @transform_4, window_bounds = array<i64: 1, 1>}, {transform_indices = @transform_5, window_bounds = array<i64: 8, 4>}]} {
    %c0 = arith.constant 0 : index
    %c0_0 = arith.constant 0 : index
    %0 = vector.load %arg1[%c0, %c0_0] : memref<8x128xf32, #tpu.memory_space<vmem>>, vector<8x128xf32>
    %c0_1 = arith.constant 0 : index
    %c0_2 = arith.constant 0 : index
    %1 = vector.load %arg2[%c0_1, %c0_2] : memref<128x128xf32, #tpu.memory_space<vmem>>, vector<128x128xf32>
    %cst = arith.constant dense<0.000000e+00> : vector<8x128xf32>
    %2 = tpu.matmul %0, %1, %cst {dimension_numbers = #tpu.dot_dimension_numbers<[1], [0], [0], [1], [0, 0, 1, 1], [], []>} : vector<8x128xf32>, vector<128x128xf32>, vector<8x128xf32> -> vector<8x128xf32>
    %c0_3 = arith.constant 0 : index
    %c0_4 = arith.constant 0 : index
    %3 = vector.load %arg3[%c0_3, %c0_4] : memref<1x128xf32, #tpu.memory_space<vmem>>, vector<1x128xf32>
    %4 = vector.broadcast %3 : vector<1x128xf32> to vector<8x128xf32>
    %5 = arith.addf %2, %4 : vector<8x128xf32>
    %6 = arith.mulf %5, %5 : vector<8x128xf32>
    %cst_5 = arith.constant 0.000000e+00 : f32
    %7 = vector.broadcast %cst_5 : f32 to vector<8x128xf32>
    %8 = arith.subf %7, %6 : vector<8x128xf32>
    %9 = math.exp %8 : vector<8x128xf32>
    %c0_6 = arith.constant 0 : index
    %c0_7 = arith.constant 0 : index
    %10 = vector.load %arg4[%c0_6, %c0_7] : memref<128x4xf32, #tpu.memory_space<vmem>>, vector<128x4xf32>
    %cst_8 = arith.constant dense<0.000000e+00> : vector<8x4xf32>
    %11 = tpu.matmul %9, %10, %cst_8 {dimension_numbers = #tpu.dot_dimension_numbers<[1], [0], [0], [1], [0, 0, 1, 1], [], []>} : vector<8x128xf32>, vector<128x4xf32>, vector<8x4xf32> -> vector<8x4xf32>
    %c0_9 = arith.constant 0 : index
    %c0_10 = arith.constant 0 : index
    %12 = memref.load %arg5[%c0_9, %c0_10] : memref<1x1xf32, #tpu.memory_space<smem>>
    %13 = vector.broadcast %12 : f32 to vector<8x4xf32>
    %14 = arith.addf %11, %13 : vector<8x4xf32>
    %c0_11 = arith.constant 0 : index
    %c0_12 = arith.constant 0 : index
    %15 = vector.load %arg6[%c0_11, %c0_12] : memref<8x4xf32, #tpu.memory_space<vmem>>, vector<8x4xf32>
    tpu.vector_store %arg6[%c0_11, %c0_12], %14 {strides = array<i32>} : memref<8x4xf32, #tpu.memory_space<vmem>>, vector<8x4xf32>,
    return
  }
  func.func @transform_0(%arg0: i32) -> (i32, i32) {
    %c0_i32 = arith.constant 0 : i32
    %c0_i32_0 = arith.constant 0 : i32
    return %arg0, %c0_i32 : i32, i32
  }
  func.func @transform_1(%arg0: i32) -> (i32, i32) {
    %c0_i32 = arith.constant 0 : i32
    %c0_i32_0 = arith.constant 0 : i32
    %c0_i32_1 = arith.constant 0 : i32
    return %c0_i32, %c0_i32_0 : i32, i32
  }
  func.func @transform_2(%arg0: i32) -> (i32, i32) {
    %c0_i32 = arith.constant 0 : i32
    %c0_i32_0 = arith.constant 0 : i32
    %c0_i32_1 = arith.constant 0 : i32
    return %c0_i32, %c0_i32_0 : i32, i32
  }
  func.func @transform_3(%arg0: i32) -> (i32, i32) {
    %c0_i32 = arith.constant 0 : i32
    %c0_i32_0 = arith.constant 0 : i32
    %c0_i32_1 = arith.constant 0 : i32
    return %c0_i32, %c0_i32_0 : i32, i32
  }
  func.func @transform_4(%arg0: i32) -> (i32, i32) {
    %c0_i32 = arith.constant 0 : i32
    %c0_i32_0 = arith.constant 0 : i32
    %c0_i32_1 = arith.constant 0 : i32
    return %c0_i32, %c0_i32_0 : i32, i32
  }
  func.func @transform_5(%arg0: i32) -> (i32, i32) {
    %c0_i32 = arith.constant 0 : i32
    %c0_i32_0 = arith.constant 0 : i32
    return %arg0, %c0_i32 : i32, i32
  }
}

</mosaic_0001>

<bundles_post_ra>
// kernel: tpu_custom_call.1
= control target key start
LH: loop header
LB: loop body
LE: loop exit
PB: predicated region body
PF: predicated region fallthrough
CT: control target
= control target key end

     0   :  { %11 = vsyncpa [#allocation4], 0  ;;  %s358_s18 = smov [#allocation3]   ;;  %s533_s0 = inlined_call_operand.hbm [shape: f32[8,128], index: 0, kind: input, shape index: {}]   ;;  %s534_s1 = inlined_call_operand.vmem [shape: f32[128,128], index: 1, kind: input, shape index: {}]   ;;  %s535_s2 = inlined_call_operand.vmem [shape: f32[1,128], index: 2, kind: input, shape index: {}]   ;;  %s536_s3 = inlined_call_operand.vmem [shape: f32[128,4], index: 3, kind: input, shape index: {}]   ;;  %s537_s4 = inlined_call_operand.<no memory space> [shape: f32[1,1], index: 4, kind: input, shape index: {}]   ;;  %s538_s5 = inlined_call_operand.vmem [shape: f32[8,4], index: 5, kind: output, shape index: {}]  }
   0x1   :  { %s18_s19 = sshll.u32 %s358_s18, 4  ;;  %s19_s19 = int_to_ptr.vmem [resolvable:$true] %s18_s19 }
   0x2   :  { %s344_s20 = scalar_lea.vmem %s19_s19, 128  ;;  %p349_p1 = scmp.lt.s32.totalorder %s19_s19, %s19_s19 }
   0x3   :  { %p345_p0 = scmp.ne.s32.totalorder %s19_s19, %s344_s20  ;;  %p350_p2 = scmp.lt.s32.totalorder %s344_s20, %s344_s20 }
   0x5   :  { %p351_p3 = por %p350_p2, %p349_p1 }
   0x7   :  { %p352_p4 = pnand %p351_p3, %p345_p0 }
   0x9   :  { %355 = shalt.err (!%p352_p4)
}
   0xa   :  { %21 = dma.hbm_to_vmem [thread:$0]  %s533_s0, 128, %s19_s19, [#allocation4]  }
   0xb   :  { %356 = dma.done.wait [#allocation4], 128  }
   0xc   :  { %357 = vsyncadd [#allocation4], 4294967168  ;;  %v359_v0 = vmov 0.0   ;;  %vm360_vm0 = vmmov 0   ;;  %v49_v1 = vld [vmem:[%s534_s1 + $0x78] sm:$0xff]  ;;  %v48_v2 = vld [vmem:[%s534_s1 + $0x70] sm:$0xff]  ;;  %v148_v42 = vstv %s537_s4 }
   0xd   :  { %261 = vmatprep.subr.mxu0 %v359_v0  ;;  %293 = vmatprep.mubr.msk.f32.mxu0 %vm360_vm0, %v359_v0  ;;  %v47_v3 = vld [vmem:[%s534_s1 + $0x68] sm:$0xff]  ;;  %v46_v4 = vld [vmem:[%s534_s1 + $0x60] sm:$0xff]  ;;  %v146_v5 = vld [vmem:[%s536_s3 + $0x78] sm:$0xff]  ;;  %vm219_vm1 = vcmask 31744  }
   0xe   :  { %296 = vmatprep.subr.mxu1 %v359_v0  ;;  %328 = vmatprep.mubr.msk.f32.mxu1 %vm360_vm0, %v359_v0  ;;  %v45_v6 = vld [vmem:[%s534_s1 + $0x58] sm:$0xff]  ;;  %v145_v7 = vld [vmem:[%s536_s3 + $0x70] sm:$0xff]  ;;  %v144_v8 = vld [vmem:[%s536_s3 + $0x68] sm:$0xff] }
   0xf   :  { %262 = vmatpush3.msra.mxu0 %v49_v1  ;;  %297 = vmatpush3.msra.mxu1 %v146_v5  ;;  %v44_v9 = vld [vmem:[%s534_s1 + $0x50] sm:$0xff]  ;;  %v143_v10 = vld [vmem:[%s536_s3 + $0x60] sm:$0xff]  ;;  %v43_v11 = vld [vmem:[%s534_s1 + $0x48] sm:$0xff] }
  0x10   :  { %263 = vmatprep.subr.mxu0 %v359_v0  ;;  %298 = vmatprep.subr.mxu1 %v359_v0  ;;  %v42_v12 = vld [vmem:[%s534_s1 + $0x40] sm:$0xff]  ;;  %v41_v13 = vld [vmem:[%s534_s1 + $0x38] sm:$0xff]  ;;  %v40_v14 = vld [vmem:[%s534_s1 + $0x30] sm:$0xff] }
  0x11   :  { %264 = vmatpush3.msra.mxu0 %v48_v2  ;;  %299 = vmatpush3.msra.mxu1 %v145_v7  ;;  %v39_v15 = vld [vmem:[%s534_s1 + $0x28] sm:$0xff]  ;;  %v38_v16 = vld [vmem:[%s534_s1 + $0x20] sm:$0xff]  ;;  %v37_v17 = vld [vmem:[%s534_s1 + $0x18] sm:$0xff] }
  0x12   :  { %265 = vmatprep.subr.mxu0 %v359_v0  ;;  %300 = vmatprep.subr.mxu1 %v359_v0  ;;  %v36_v18 = vld [vmem:[%s534_s1 + $0x10] sm:$0xff]  ;;  %v35_v19 = vld [vmem:[%s534_s1 + $0x8] sm:$0xff]  ;;  %v34_v20 = vld [vmem:[%s534_s1] sm:$0xff] }
  0x13   :  { %266 = vmatpush3.msra.mxu0 %v47_v3  ;;  %301 = vmatpush3.msra.mxu1 %v144_v8  ;;  %v33_v21 = vld [vmem:[#allocation3] sm:$0xff]  ;;  %v142_v22 = vld [vmem:[%s536_s3 + $0x58] sm:$0xff]  ;;  %v141_v23 = vld [vmem:[%s536_s3 + $0x50] sm:$0xff] }
  0x14   :  { %267 = vmatprep.subr.mxu0 %v359_v0  ;;  %302 = vmatprep.subr.mxu1 %v359_v0  ;;  %v140_v24 = vld [vmem:[%s536_s3 + $0x48] sm:$0xff]  ;;  %v139_v25 = vld [vmem:[%s536_s3 + $0x40] sm:$0xff]  ;;  %v138_v26 = vld [vmem:[%s536_s3 + $0x38] sm:$0xff] }
  0x15   :  { %268 = vmatpush3.msra.mxu0 %v46_v4  ;;  %303 = vmatpush3.msra.mxu1 %v143_v10  ;;  %v137_v27 = vld [vmem:[%s536_s3 + $0x30] sm:$0xff]  ;;  %v136_v28 = vld [vmem:[%s536_s3 + $0x28] sm:$0xff]  ;;  %v135_v29 = vld [vmem:[%s536_s3 + $0x20] sm:$0xff] }
  0x16   :  { %269 = vmatprep.subr.mxu0 %v359_v0  ;;  %304 = vmatprep.subr.mxu1 %v359_v0  ;;  %v134_v30 = vld [vmem:[%s536_s3 + $0x18] sm:$0xff]  ;;  %v133_v31 = vld [vmem:[%s536_s3 + $0x10] sm:$0xff]  ;;  %v132_v32 = vld [vmem:[%s536_s3 + $0x8] sm:$0xff] }
  0x17   :  { %270 = vmatpush3.msra.mxu0 %v45_v6  ;;  %305 = vmatpush3.msra.mxu1 %v142_v22  ;;  %v131_v33 = vld [vmem:[%s536_s3] sm:$0xff] }
  0x18   :  { %271 = vmatprep.subr.mxu0 %v359_v0  ;;  %306 = vmatprep.subr.mxu1 %v359_v0  ;;  %v226_v34 = vld [vmem:[%s535_s2] ss:$0 sm:$0xff] }
  0x19   :  { %272 = vmatpush3.msra.mxu0 %v44_v9  ;;  %307 = vmatpush3.msra.mxu1 %v141_v23 }
  0x1a   :  { %273 = vmatprep.subr.mxu0 %v359_v0  ;;  %308 = vmatprep.subr.mxu1 %v359_v0 }
  0x1b   :  { %274 = vmatpush3.msra.mxu0 %v43_v11  ;;  %309 = vmatpush3.msra.mxu1 %v140_v24 }
  0x1c   :  { %275 = vmatprep.subr.mxu0 %v359_v0  ;;  %310 = vmatprep.subr.mxu1 %v359_v0 }
  0x1d   :  { %276 = vmatpush3.msra.mxu0 %v42_v12  ;;  %311 = vmatpush3.msra.mxu1 %v139_v25 }
  0x1e   :  { %277 = vmatprep.subr.mxu0 %v359_v0  ;;  %312 = vmatprep.subr.mxu1 %v359_v0 }
  0x1f   :  { %278 = vmatpush3.msra.mxu0 %v41_v13  ;;  %313 = vmatpush3.msra.mxu1 %v138_v26 }
  0x20   :  { %279 = vmatprep.subr.mxu0 %v359_v0  ;;  %314 = vmatprep.subr.mxu1 %v359_v0 }
  0x21   :  { %280 = vmatpush3.msra.mxu0 %v40_v14  ;;  %315 = vmatpush3.msra.mxu1 %v137_v27 }
  0x22   :  { %281 = vmatprep.subr.mxu0 %v359_v0  ;;  %316 = vmatprep.subr.mxu1 %v359_v0 }
  0x23   :  { %282 = vmatpush3.msra.mxu0 %v39_v15  ;;  %317 = vmatpush3.msra.mxu1 %v136_v28 }
  0x24   :  { %283 = vmatprep.subr.mxu0 %v359_v0  ;;  %318 = vmatprep.subr.mxu1 %v359_v0 }
  0x25   :  { %284 = vmatpush3.msra.mxu0 %v38_v16  ;;  %319 = vmatpush3.msra.mxu1 %v135_v29 }
  0x26   :  { %285 = vmatprep.subr.mxu0 %v359_v0  ;;  %320 = vmatprep.subr.mxu1 %v359_v0 }
  0x27   :  { %286 = vmatpush3.msra.mxu0 %v37_v17  ;;  %321 = vmatpush3.msra.mxu1 %v134_v30 }
  0x28   :  { %287 = vmatprep.subr.mxu0 %v359_v0  ;;  %322 = vmatprep.subr.mxu1 %v359_v0 }
  0x29   :  { %288 = vmatpush3.msra.mxu0 %v36_v18  ;;  %323 = vmatpush3.msra.mxu1 %v133_v31 }
  0x2a   :  { %289 = vmatprep.subr.mxu0 %v359_v0  ;;  %324 = vmatprep.subr.mxu1 %v359_v0 }
  0x2b   :  { %290 = vmatpush3.msra.mxu0 %v35_v19  ;;  %325 = vmatpush3.msra.mxu1 %v132_v32 }
  0x2c   :  { %291 = vmatprep.subr.mxu0 %v359_v0  ;;  %326 = vmatprep.subr.mxu1 %v359_v0 }
  0x2d   :  { %292 = vmatpush3.msra.mxu0 %v34_v20  ;;  %327 = vmatpush3.msra.mxu1 %v131_v33 }
  0x2e   :  { %294 = vmatmul.mubr.f32.vlgmr.msra.gmra.mxu0 %v33_v21 }
  0xee   :  { %v123_v35 = vpop.f32.mrf.mxu0 }
  0xef   :  { %v124_v36 = vadd.f32 %v226_v34, %v123_v35 }
  0xf0   :  { %v295_v37 = vpop.f32.mrf.mxu0 }
  0xf1   :  { %v127_v38 = vmul.f32 %v124_v36, %v124_v36 }
  0xf3   :  { %v128_v39 = vsub.f32 0.0, %v127_v38 }
  0xf5   :  { %v129_v40 = vmul.f32 1.442695, %v128_v39 }
  0xf7   :  { %334 = vpow2.f32 %v129_v40 }
 0x104   :  { %v335_v41 = vpop.eup %334 }
 0x105   :  { %329 = vmatmul.mubr.f32.vlgmr.msra.gmra.mxu1 %v335_v41 }
 0x1c5   :  { %v215_v43 = vpop.f32.mrf.mxu1 }
 0x1c6   :  { %v216_v44 = vadd.f32 %v215_v43, %v148_v42 }
 0x1c7   :  { %v330_v45 = vpop.f32.mrf.mxu1 }
 0x1c8   :  { %220 = vst.msk [vmem:[%s538_s5] sm:$0xff] %vm219_vm1, %v216_v44 }
 0x1c9   :  { %225 = vsyncpa [#allocation4], 1 }

</bundles_post_ra>
